<compile_context>
chip_gen: v7x
topology: tpu7x:2x2x1
jax: 0.10.0
libtpu: 0.0.40
codegen_flags: <defaults>
</compile_context>

<pallas_src>
import functools

import jax
import jax.numpy as jnp
from jax.experimental import pallas as pl
from jax.experimental.pallas import tpu as pltpu


def _round_up(x, m):
    return (x + m - 1) // m * m


# ----------------------------------------------------------------------------
# Pass 1: conv-as-GEMM per M tile + global per-channel sum / sum-of-squares.
# ----------------------------------------------------------------------------
def _conv_stats_kernel(p_ref, w_ref, y_ref, sum_ref, sq_ref):
    # p_ref: (TM, Kp) bf16 im2col tile; w_ref: (Kp, Cp) bf16.
    y = jnp.dot(p_ref[...], w_ref[...], preferred_element_type=jnp.float32)
    y_ref[...] = y                                        # raw conv output (f32)

    @pl.when(pl.program_id(0) == 0)
    def _():
        sum_ref[...] = jnp.zeros_like(sum_ref)
        sq_ref[...] = jnp.zeros_like(sq_ref)

    # One-pass BN statistics, accumulated across all M tiles (grid "arbitrary").
    sum_ref[...] += jnp.sum(y, axis=0, keepdims=True)
    sq_ref[...] += jnp.sum(y * y, axis=0, keepdims=True)


# ----------------------------------------------------------------------------
# Pass 2: normalize + affine + LeakyReLU(0.2) per M tile (independent tiles).
# ----------------------------------------------------------------------------
def _bn_lrelu_kernel(y_ref, sum_ref, sq_ref, g_ref, b_ref, o_ref, *, inv_count):
    mean = sum_ref[...] * inv_count                            # (1, Cp)
    var = jnp.maximum(sq_ref[...] * inv_count - mean * mean, 0.0)
    scale = g_ref[...] * jax.lax.rsqrt(var + 1e-5)             # gamma * rstd
    shift = b_ref[...] - mean * scale
    z = y_ref[...] * scale + shift                             # (TM, Cp)
    o_ref[...] = jnp.where(z >= 0.0, z, 0.2 * z)


def cnn_block(x, weight, gamma, beta, stride, *, tile_m=256):
    """x: (N, Cin, H, W) f32, weight: (Cout, Cin, 4, 4) f32 -> (N, Cout, Ho, Wo) f32."""
    N, Cin, H, W = x.shape
    Cout = weight.shape[0]
    K, pad, s = 4, 1, stride
    Ho = (H + 2 * pad - K) // s + 1
    Wo = (W + 2 * pad - K) // s + 1

    # ---- plain-JAX glue: reflect pad (NHWC) + tap gather, tap-major K axis,
    # single concatenate (no extra transpose copy of the expanded array).
    # TODO(synk): for large inputs the 16x im2col expansion should move
    # in-kernel (tap gather from the un-expanded padded NHWC input in HBM).
    xp = jnp.pad(x.transpose(0, 2, 3, 1),
                 ((0, 0), (pad, pad), (pad, pad), (0, 0)),
                 mode="reflect").astype(jnp.bfloat16)          # (N, Hp, Wp, Cin)
    cols = [
        xp[:, kh: kh + s * (Ho - 1) + 1: s, kw: kw + s * (Wo - 1) + 1: s, :]
        for kh in range(K) for kw in range(K)
    ]
    patches = jnp.concatenate(cols, axis=-1)                   # (N, Ho, Wo, 16*Cin)
    Kflat = Cin * K * K
    M = N * Ho * Wo
    patches = patches.reshape(M, Kflat)                        # contiguous reshape

    # ---- pad to lane / MXU friendly shapes.
    TM = tile_m
    Mp = _round_up(M, TM)
    Kp = _round_up(Kflat, 128)
    Cp = _round_up(Cout, 128)

    patches = jnp.pad(patches, ((0, Mp - M), (0, Kp - Kflat)))
    # Weight rows ordered (kh, kw, ci) to match the tap-major patches K axis.
    w_mat = weight.transpose(2, 3, 1, 0).reshape(Kflat, Cout).astype(jnp.bfloat16)
    w_mat = jnp.pad(w_mat, ((0, Kp - Kflat), (0, Cp - Cout)))
    g = jnp.pad(gamma.astype(jnp.float32).reshape(1, Cout), ((0, 0), (0, Cp - Cout)))
    b = jnp.pad(beta.astype(jnp.float32).reshape(1, Cout), ((0, 0), (0, Cp - Cout)))

    n_tiles = Mp // TM
    vmem_cap = 32 * 1024 * 1024   # safe on v5e/v6e/v7x; per-step tiles are ~1-8 MiB

    # ---- pass 1: tiled GEMM + global channel sum / sumsq.
    y, csum, csq = pl.pallas_call(
        _conv_stats_kernel,
        out_shape=(
            jax.ShapeDtypeStruct((Mp, Cp), jnp.float32),
            jax.ShapeDtypeStruct((1, Cp), jnp.float32),
            jax.ShapeDtypeStruct((1, Cp), jnp.float32),
        ),
        grid=(n_tiles,),
        in_specs=[
            pl.BlockSpec((TM, Kp), lambda i: (i, 0)),
            pl.BlockSpec((Kp, Cp), lambda i: (0, 0)),
        ],
        out_specs=(
            pl.BlockSpec((TM, Cp), lambda i: (i, 0)),
            pl.BlockSpec((1, Cp), lambda i: (0, 0)),
            pl.BlockSpec((1, Cp), lambda i: (0, 0)),
        ),
        compiler_params=pltpu.CompilerParams(
            dimension_semantics=("arbitrary",),        # stats carry across M tiles
            vmem_limit_bytes=vmem_cap),
        cost_estimate=pl.CostEstimate(
            flops=2 * Mp * Kp * Cp,
            transcendentals=0,
            bytes_accessed=Mp * Kp * 2 + Kp * Cp * 2 + Mp * Cp * 4),
    )(patches, w_mat)

    # ---- pass 2: normalize + affine + LeakyReLU.
    # TODO(synk): BatchNorm2d running_mean/running_var updates (training side
    # effect) are not materialized; the forward output uses batch stats, which
    # matches a freshly-constructed nn.BatchNorm2d in training mode.
    out = pl.pallas_call(
        functools.partial(_bn_lrelu_kernel, inv_count=1.0 / float(M)),
        out_shape=jax.ShapeDtypeStruct((Mp, Cp), jnp.float32),
        grid=(n_tiles,),
        in_specs=[
            pl.BlockSpec((TM, Cp), lambda i: (i, 0)),
            pl.BlockSpec((1, Cp), lambda i: (0, 0)),
            pl.BlockSpec((1, Cp), lambda i: (0, 0)),
            pl.BlockSpec((1, Cp), lambda i: (0, 0)),
            pl.BlockSpec((1, Cp), lambda i: (0, 0)),
        ],
        out_specs=pl.BlockSpec((TM, Cp), lambda i: (i, 0)),
        compiler_params=pltpu.CompilerParams(
            dimension_semantics=("parallel",),          # v7x: shard tiles across TCs
            vmem_limit_bytes=vmem_cap),
        cost_estimate=pl.CostEstimate(
            flops=4 * Mp * Cp,
            transcendentals=0,
            bytes_accessed=2 * Mp * Cp * 4),
    )(y, csum, csq, g, b)

    # ---- drop padding, back to NCHW.
    return out[:M, :Cout].reshape(N, Ho, Wo, Cout).transpose(0, 3, 1, 2)


if __name__ == "__main__":
    key = jax.random.PRNGKey(0)
    kx, kw = jax.random.split(key)

    N, Cin, H, W = 2, 4, 16, 16
    Cout, stride = 8, 2

    x = jax.random.normal(kx, (N, Cin, H, W), dtype=jnp.float32)
    weight = jax.random.normal(kw, (Cout, Cin, 4, 4), dtype=jnp.float32) * 0.05
    gamma = jnp.ones((Cout,), dtype=jnp.float32)   # BatchNorm2d default weight
    beta = jnp.zeros((Cout,), dtype=jnp.float32)   # BatchNorm2d default bias

    y = cnn_block(x, weight, gamma, beta, stride)
    jax.block_until_ready(y)
    assert y.shape == (N, Cout, H // stride, W // stride)
    print("KERNEL_OK")
</pallas_src>

<mosaic_0001>
module attributes {stable_mosaic.version = 11 : i64} {
  func.func @_conv_stats_kernel(%arg0: i32, %arg1: memref<256x128xbf16, #tpu.memory_space<vmem>>, %arg2: memref<128x128xbf16, #tpu.memory_space<vmem>>, %arg3: memref<256x128xf32, #tpu.memory_space<vmem>>, %arg4: memref<1x128xf32, #tpu.memory_space<vmem>>, %arg5: memref<1x128xf32, #tpu.memory_space<vmem>>) attributes {dimension_semantics = [#tpu.dimension_semantics<arbitrary>], iteration_bounds = array<i64: 1>, scalar_prefetch = 0 : i64, scratch_operands = 0 : i64, tpu.core_type = #tpu.core_type<tc>, window_params = [{transform_indices = @transform_0, window_bounds = array<i64: 256, 128>}, {pipeline_mode = #tpu.pipeline_mode<synchronous>, transform_indices = @transform_1, window_bounds = array<i64: 128, 128>}, {transform_indices = @transform_2, window_bounds = array<i64: 256, 128>}, {pipeline_mode = #tpu.pipeline_mode<synchronous>, transform_indices = @transform_3, window_bounds = array<i64: 1, 128>}, {pipeline_mode = #tpu.pipeline_mode<synchronous>, transform_indices = @transform_4, window_bounds = array<i64: 1, 128>}]} {
    %c0 = arith.constant 0 : index
    %c0_0 = arith.constant 0 : index
    %0 = vector.load %arg1[%c0, %c0_0] : memref<256x128xbf16, #tpu.memory_space<vmem>>, vector<256x128xbf16>
    %c0_1 = arith.constant 0 : index
    %c0_2 = arith.constant 0 : index
    %1 = vector.load %arg2[%c0_1, %c0_2] : memref<128x128xbf16, #tpu.memory_space<vmem>>, vector<128x128xbf16>
    %cst = arith.constant dense<0.000000e+00> : vector<256x128xf32>
    %2 = tpu.matmul %0, %1, %cst {dimension_numbers = #tpu.dot_dimension_numbers<[1], [0], [0], [1], [0, 0, 1, 1], [], []>} : vector<256x128xbf16>, vector<128x128xbf16>, vector<256x128xf32> -> vector<256x128xf32>
    %c0_3 = arith.constant 0 : index
    %c0_4 = arith.constant 0 : index
    %3 = vector.load %arg3[%c0_3, %c0_4] : memref<256x128xf32, #tpu.memory_space<vmem>>, vector<256x128xf32>
    tpu.vector_store %arg3[%c0_3, %c0_4], %2 {strides = array<i32>} : memref<256x128xf32, #tpu.memory_space<vmem>>, vector<256x128xf32>,
    %c0_i32 = arith.constant 0 : i32
    %4 = arith.cmpi eq, %arg0, %c0_i32 : i32
    %5 = arith.extui %4 : i1 to i32
    %c0_i32_5 = arith.constant 0 : i32
    %6 = arith.cmpi ne, %5, %c0_i32_5 : i32
    scf.if %6 {
      %cst_16 = arith.constant 0.000000e+00 : f32
      %18 = vector.broadcast %cst_16 : f32 to vector<1x128xf32>
      %c0_17 = arith.constant 0 : index
      %c0_18 = arith.constant 0 : index
      %19 = vector.load %arg4[%c0_17, %c0_18] : memref<1x128xf32, #tpu.memory_space<vmem>>, vector<1x128xf32>
      tpu.vector_store %arg4[%c0_17, %c0_18], %18 {strides = array<i32>} : memref<1x128xf32, #tpu.memory_space<vmem>>, vector<1x128xf32>,
      %cst_19 = arith.constant 0.000000e+00 : f32
      %20 = vector.broadcast %cst_19 : f32 to vector<1x128xf32>
      %c0_20 = arith.constant 0 : index
      %c0_21 = arith.constant 0 : index
      %21 = vector.load %arg5[%c0_20, %c0_21] : memref<1x128xf32, #tpu.memory_space<vmem>>, vector<1x128xf32>
      tpu.vector_store %arg5[%c0_20, %c0_21], %20 {strides = array<i32>} : memref<1x128xf32, #tpu.memory_space<vmem>>, vector<1x128xf32>,
    } else {
    }
    %c0_6 = arith.constant 0 : index
    %c0_7 = arith.constant 0 : index
    %7 = vector.load %arg4[%c0_6, %c0_7] : memref<1x128xf32, #tpu.memory_space<vmem>>, vector<1x128xf32>
    %cst_8 = arith.constant dense<0.000000e+00> : vector<128xf32>
    %8 = vector.multi_reduction <add>, %2, %cst_8 [0] : vector<256x128xf32> to vector<128xf32>
    %9 = vector.shape_cast %8 : vector<128xf32> to vector<1x128xf32>
    %10 = arith.addf %7, %9 : vector<1x128xf32>
    %c0_9 = arith.constant 0 : index
    %c0_10 = arith.constant 0 : index
    %11 = vector.load %arg4[%c0_9, %c0_10] : memref<1x128xf32, #tpu.memory_space<vmem>>, vector<1x128xf32>
    tpu.vector_store %arg4[%c0_9, %c0_10], %10 {strides = array<i32>} : memref<1x128xf32, #tpu.memory_space<vmem>>, vector<1x128xf32>,
    %c0_11 = arith.constant 0 : index
    %c0_12 = arith.constant 0 : index
    %12 = vector.load %arg5[%c0_11, %c0_12] : memref<1x128xf32, #tpu.memory_space<vmem>>, vector<1x128xf32>
    %13 = arith.mulf %2, %2 : vector<256x128xf32>
    %cst_13 = arith.constant dense<0.000000e+00> : vector<128xf32>
    %14 = vector.multi_reduction <add>, %13, %cst_13 [0] : vector<256x128xf32> to vector<128xf32>
    %15 = vector.shape_cast %14 : vector<128xf32> to vector<1x128xf32>
    %16 = arith.addf %12, %15 : vector<1x128xf32>
    %c0_14 = arith.constant 0 : index
    %c0_15 = arith.constant 0 : index
    %17 = vector.load %arg5[%c0_14, %c0_15] : memref<1x128xf32, #tpu.memory_space<vmem>>, vector<1x128xf32>
    tpu.vector_store %arg5[%c0_14, %c0_15], %16 {strides = array<i32>} : memref<1x128xf32, #tpu.memory_space<vmem>>, vector<1x128xf32>,
    return
  }
  func.func @transform_0(%arg0: i32) -> (i32, i32) {
    %c0_i32 = arith.constant 0 : i32
    %c0_i32_0 = arith.constant 0 : i32
    return %arg0, %c0_i32 : i32, i32
  }
  func.func @transform_1(%arg0: i32) -> (i32, i32) {
    %c0_i32 = arith.constant 0 : i32
    %c0_i32_0 = arith.constant 0 : i32
    %c0_i32_1 = arith.constant 0 : i32
    return %c0_i32, %c0_i32_0 : i32, i32
  }
  func.func @transform_2(%arg0: i32) -> (i32, i32) {
    %c0_i32 = arith.constant 0 : i32
    %c0_i32_0 = arith.constant 0 : i32
    return %arg0, %c0_i32 : i32, i32
  }
  func.func @transform_3(%arg0: i32) -> (i32, i32) {
    %c0_i32 = arith.constant 0 : i32
    %c0_i32_0 = arith.constant 0 : i32
    %c0_i32_1 = arith.constant 0 : i32
    return %c0_i32, %c0_i32_0 : i32, i32
  }
  func.func @transform_4(%arg0: i32) -> (i32, i32) {
    %c0_i32 = arith.constant 0 : i32
    %c0_i32_0 = arith.constant 0 : i32
    %c0_i32_1 = arith.constant 0 : i32
    return %c0_i32, %c0_i32_0 : i32, i32
  }
}

</mosaic_0001>

<bundles_post_ra>
// kernel: tpu_custom_call.1
= control target key start
LH: loop header
LB: loop body
LE: loop exit
PB: predicated region body
PF: predicated region fallthrough
CT: control target
= control target key end

     0   :  { %10 = vsyncpa [#allocation3], 0  ;;  %s1063_s0 = inlined_call_operand.hbm [shape: bf16[256,128], index: 0, kind: input, shape index: {}]   ;;  %s1064_s1 = inlined_call_operand.hbm [shape: bf16[128,128], index: 1, kind: input, shape index: {}]   ;;  %s1065_s2 = inlined_call_operand.hbm [shape: f32[256,128], index: 2, kind: output, shape index: {0}]   ;;  %s1066_s3 = inlined_call_operand.hbm [shape: f32[1,128], index: 3, kind: output, shape index: {1}]   ;;  %s1067_s4 = inlined_call_operand.hbm [shape: f32[1,128], index: 4, kind: output, shape index: {2}]  }
   0x1   :  { %11 = vsyncpa [#allocation6], 0 }
   0x2   :  { %12 = vsyncpa [#allocation4], 0 }
   0x3   :  { %13 = vsyncpa [#allocation9], 0  ;;  %s857_s15 = smov [#allocation2]   ;;  %s739_s19 = scalar_lea.hbm %s1063_s0, 2048 }
   0x4   :  { %s19_s16 = sshll.u32 %s857_s15, 4  ;;  %p740_p0 = scmp.ne.s32.totalorder %s1063_s0, %s739_s19  ;;  %s20_s16 = int_to_ptr.vmem [resolvable:$true] %s19_s16 }
   0x5   :  { %p743_p1 = scmp.lt.u32.totalorder %s739_s19, %s1063_s0 }
   0x7   :  { %p745_p2 = pnand %p743_p1, %p740_p0 }
   0x9   :  { %748 = shalt.err (!%p745_p2)
}
   0xa   :  { %s749_s24 = scalar_lea.vmem %s20_s16, 2048  ;;  %p754_p4 = scmp.lt.s32.totalorder %s20_s16, %s20_s16 }
   0xb   :  { %p750_p3 = scmp.ne.s32.totalorder %s20_s16, %s749_s24  ;;  %p755_p5 = scmp.lt.s32.totalorder %s749_s24, %s749_s24 }
   0xd   :  { %p756_p6 = por %p755_p5, %p754_p4 }
   0xf   :  { %p757_p7 = pnand %p756_p6, %p750_p3 }
  0x11   :  { %760 = shalt.err (!%p757_p7)
}
  0x12   :  { %s858_s25 = smov 64   ;;  %s859_s26 = smov 4  }
  0x13   :  { %25 = dma.hbm_to_vmem [thread:$0]  %s1063_s0, 2048, %s20_s16, [#allocation3], %s858_s25, %s858_s25, %s859_s26  }
  0x14   :  { %s860_s29 = smov [#allocation5]   ;;  %s761_s7 = scalar_lea.hbm %s1064_s1, 1024 }
  0x15   :  { %s31_s30 = sshll.u32 %s860_s29, 4  ;;  %p762_p8 = scmp.ne.s32.totalorder %s1064_s1, %s761_s7  ;;  %s32_s30 = int_to_ptr.vmem [resolvable:$true] %s31_s30 }
  0x16   :  { %p765_p9 = scmp.lt.u32.totalorder %s761_s7, %s1064_s1 }
  0x18   :  { %p767_p10 = pnand %p765_p9, %p762_p8 }
  0x1a   :  { %770 = shalt.err (!%p767_p10)
}
  0x1b   :  { %s771_s12 = scalar_lea.vmem %s32_s30, 1024  ;;  %p776_p12 = scmp.lt.s32.totalorder %s32_s30, %s32_s30 }
  0x1c   :  { %p772_p11 = scmp.ne.s32.totalorder %s32_s30, %s771_s12  ;;  %p777_p13 = scmp.lt.s32.totalorder %s771_s12, %s771_s12 }
  0x1e   :  { %p778_p0 = por %p777_p13, %p776_p12 }
  0x20   :  { %p779_p1 = pnand %p778_p0, %p772_p11 }
  0x22   :  { %782 = shalt.err (!%p779_p1)
}
  0x23   :  { %37 = dma.hbm_to_vmem [thread:$0]  %s1064_s1, 1024, %s32_s30, [#allocation6], %s858_s25, %s858_s25, %s859_s26  }
  0x24   :  { %849 = dma.done.wait [#allocation3], 2048  }
  0x25   :  { %850 = vsyncadd [#allocation3], 4294965248 }
  0x26   :  { %851 = dma.done.wait [#allocation6], 1024  }
  0x27   :  { %852 = vsyncadd [#allocation6], 4294966272  ;;  %v715_v0 = vld [vmem:[#allocation5] sm:$0xff]   ;;  %v716_v1 = vld [vmem:[#allocation5 + $0x8] sm:$0xff]   ;;  %v861_v24 = vmov 0.0   ;;  %s862_s1 = smov [#allocation7]  }
  0x28   :  { %641 = vmatprep.subr.bf16.mxu0 %v715_v0  ;;  %689 = vmatprep.subr.bf16.mxu1 %v715_v0  ;;  %v717_v2 = vld [vmem:[#allocation5 + $0x10] sm:$0xff]   ;;  %v718_v3 = vld [vmem:[#allocation5 + $0x18] sm:$0xff]   ;;  %v723_v4 = vld [vmem:[#allocation2] sm:$0xff]   ;;  %434 = vst [vmem:[#allocation8] sm:$0x1] %v861_v24  ;;  %s553_s14 = sshll.u32 %s862_s1, 4  ;;  %s957_s14 = int_to_ptr.vmem [resolvable:$true] %s553_s14 }
  0x29   :  { %642 = vmatpush3.bf16.msra.mxu0 %v715_v0  ;;  %697 = vmatpush3.bf16.msra.mxu1 %v715_v0  ;;  %v719_v5 = vld [vmem:[#allocation5 + $0x20] sm:$0xff]   ;;  %v720_v6 = vld [vmem:[#allocation5 + $0x28] sm:$0xff]   ;;  %v721_v8 = vld [vmem:[#allocation5 + $0x30] sm:$0xff]   ;;  %435 = vst [vmem:[#allocation10] sm:$0x1] %v861_v24  ;;  %s783_s15 = scalar_lea.vmem %s957_s14, 4096  ;;  %p788_p3 = scmp.lt.s32.totalorder %s957_s14, %s957_s14 }
  0x2a   :  { %643 = vmatprep.subr.bf16.mxu0 %v716_v1  ;;  %690 = vmatprep.subr.bf16.mxu1 %v716_v1  ;;  %v731_v7 = vld [vmem:[#allocation2 + $0x40] sm:$0xff]   ;;  %v722_v9 = vld [vmem:[#allocation5 + $0x38] sm:$0xff]   ;;  %v724_v10 = vld [vmem:[#allocation2 + $0x8] sm:$0xff]   ;;  %p784_p2 = scmp.ne.s32.totalorder %s957_s14, %s783_s15  ;;  %p789_p4 = scmp.lt.s32.totalorder %s783_s15, %s783_s15 }
  0x2b   :  { %657 = vmatprep.mubr.bf16.mxu0 %v723_v4  ;;  %673 = vmatprep.mubr.bf16.mxu1 %v731_v7  ;;  %v732_v11 = vld [vmem:[#allocation2 + $0x48] sm:$0xff]   ;;  %v725_v12 = vld [vmem:[#allocation2 + $0x10] sm:$0xff]   ;;  %v726_v14 = vld [vmem:[#allocation2 + $0x18] sm:$0xff]  }
  0x2c   :  { %v733_v13 = vld [vmem:[#allocation2 + $0x50] sm:$0xff]   ;;  %v734_v15 = vld [vmem:[#allocation2 + $0x58] sm:$0xff]   ;;  %v727_v16 = vld [vmem:[#allocation2 + $0x20] sm:$0xff]   ;;  %p790_p5 = por %p789_p4, %p788_p3 }
  0x2d   :  { %644 = vmatpush3.bf16.msra.mxu0 %v716_v1  ;;  %698 = vmatpush3.bf16.msra.mxu1 %v716_v1  ;;  %v735_v17 = vld [vmem:[#allocation2 + $0x60] sm:$0xff]   ;;  %v728_v18 = vld [vmem:[#allocation2 + $0x28] sm:$0xff]   ;;  %v729_v20 = vld [vmem:[#allocation2 + $0x30] sm:$0xff]  }
  0x2e   :  { %645 = vmatprep.subr.bf16.mxu0 %v717_v2  ;;  %691 = vmatprep.subr.bf16.mxu1 %v717_v2  ;;  %v736_v19 = vld [vmem:[#allocation2 + $0x68] sm:$0xff]   ;;  %v737_v21 = vld [vmem:[#allocation2 + $0x70] sm:$0xff]   ;;  %v730_v22 = vld [vmem:[#allocation2 + $0x38] sm:$0xff]   ;;  %p791_p6 = pnand %p790_p5, %p784_p2 }
  0x2f   :  { %v738_v23 = vld [vmem:[#allocation2 + $0x78] sm:$0xff]  }
  0x31   :  { %646 = vmatpush3.bf16.msra.mxu0 %v717_v2  ;;  %699 = vmatpush3.bf16.msra.mxu1 %v717_v2 }
  0x32   :  { %647 = vmatprep.subr.bf16.mxu0 %v718_v3  ;;  %692 = vmatprep.subr.bf16.mxu1 %v718_v3 }
  0x35   :  { %648 = vmatpush3.bf16.msra.mxu0 %v718_v3  ;;  %700 = vmatpush3.bf16.msra.mxu1 %v718_v3 }
  0x36   :  { %649 = vmatprep.subr.bf16.mxu0 %v719_v5  ;;  %693 = vmatprep.subr.bf16.mxu1 %v719_v5 }
  0x39   :  { %650 = vmatpush3.bf16.msra.mxu0 %v719_v5  ;;  %701 = vmatpush3.bf16.msra.mxu1 %v719_v5 }
  0x3a   :  { %651 = vmatprep.subr.bf16.mxu0 %v720_v6  ;;  %694 = vmatprep.subr.bf16.mxu1 %v720_v6 }
  0x3d   :  { %652 = vmatpush3.bf16.msra.mxu0 %v720_v6  ;;  %702 = vmatpush3.bf16.msra.mxu1 %v720_v6 }
  0x3e   :  { %653 = vmatprep.subr.bf16.mxu0 %v721_v8  ;;  %695 = vmatprep.subr.bf16.mxu1 %v721_v8 }
  0x41   :  { %654 = vmatpush3.bf16.msra.mxu0 %v721_v8  ;;  %703 = vmatpush3.bf16.msra.mxu1 %v721_v8 }
  0x42   :  { %655 = vmatprep.subr.bf16.mxu0 %v722_v9  ;;  %696 = vmatprep.subr.bf16.mxu1 %v722_v9 }
  0x45   :  { %656 = vmatpush3.bf16.msra.mxu0 %v722_v9  ;;  %704 = vmatpush3.bf16.msra.mxu1 %v722_v9 }
  0x48   :  { %658 = vmatmul.mubr.bf16.vlgmr.msra.gmra.mrb[0].mxu0 %v724_v10  ;;  %674 = vmatmul.mubr.bf16.vlgmr.msra.gmra.mrb[0].mxu1 %v732_v11 }
  0x49   :  { %661 = vmatprep.mubr.bf16.mxu0 %v725_v12  ;;  %677 = vmatprep.mubr.bf16.mxu1 %v733_v13 }
  0x50   :  { %662 = vmatmul.mubr.bf16.gmra.mrb[4].mxu0 %v726_v14  ;;  %678 = vmatmul.mubr.bf16.gmra.mrb[4].mxu1 %v734_v15 }
  0x51   :  { %665 = vmatprep.mubr.bf16.mxu0 %v727_v16  ;;  %681 = vmatprep.mubr.bf16.mxu1 %v735_v17 }
  0x58   :  { %666 = vmatmul.mubr.bf16.gmra.mrb[8].mxu0 %v728_v18  ;;  %682 = vmatmul.mubr.bf16.gmra.mrb[8].mxu1 %v736_v19 }
  0x59   :  { %669 = vmatprep.mubr.bf16.mxu0 %v729_v20  ;;  %685 = vmatprep.mubr.bf16.mxu1 %v737_v21 }
  0x60   :  { %670 = vmatmul.mubr.bf16.gmra.mrb[12].mxu0 %v730_v22  ;;  %686 = vmatmul.mubr.bf16.gmra.mrb[12].mxu1 %v738_v23 }
 0x11b   :  { %v659_v25 = vpop.f32.mrb[0].mxu0  ;;  %v916_v26 = vpop.f32.mrb[0].mxu1 }
 0x11c   :  { %400 = vst [vmem:[#allocation7 + $0x10] sm:$0xff] %v659_v25  ;;  %v271_v27 = vpop.f32.mrb[1].mxu0  ;;  %416 = vst [vmem:[#allocation7 + $0x90] sm:$0xff] %v916_v26  ;;  %v919_v28 = vpop.f32.mrb[1].mxu1  ;;  %v479_v36 = vmul.f32 %v659_v25, %v659_v25 }
 0x11d   :  { %398 = vst [vmem:[#allocation7] sm:$0xff] %v271_v27  ;;  %v660_v29 = vpop.f32.mrb[2].mxu0  ;;  %414 = vst [vmem:[#allocation7 + $0x80] sm:$0xff] %v919_v28  ;;  %v922_v30 = vpop.f32.mrb[2].mxu1  ;;  %v477_v33 = vmul.f32 %v271_v27, %v271_v27 }
 0x11e   :  { %401 = vst [vmem:[#allocation7 + $0x18] sm:$0xff] %v660_v29  ;;  %v274_v31 = vpop.f32.mrb[3].mxu0  ;;  %417 = vst [vmem:[#allocation7 + $0x98] sm:$0xff] %v922_v30  ;;  %v925_v32 = vpop.f32.mrb[3].mxu1  ;;  %v480_v39 = vmul.f32 %v660_v29, %v660_v29 }
 0x11f   :  { %399 = vst [vmem:[#allocation7 + $0x8] sm:$0xff] %v274_v31  ;;  %v437_v34 = vadd.f32 %v274_v31, %v271_v27  ;;  %v478_v35 = vmul.f32 %v274_v31, %v274_v31  ;;  %415 = vst [vmem:[#allocation7 + $0x88] sm:$0xff] %v925_v32 }
 0x121   :  { %v438_v37 = vadd.f32 %v659_v25, %v437_v34  ;;  %v509_v38 = vadd.f32 %v478_v35, %v477_v33 }
 0x123   :  { %v510_v40 = vadd.f32 %v509_v38, %v479_v36  ;;  %v663_v41 = vpop.f32.mrb[4].mxu0  ;;  %v439_v42 = vadd.f32 %v660_v29, %v438_v37  ;;  %v928_v43 = vpop.f32.mrb[4].mxu1 }
 0x124   :  { %404 = vst [vmem:[#allocation7 + $0x30] sm:$0xff] %v663_v41  ;;  %v287_v44 = vpop.f32.mrb[5].mxu0  ;;  %420 = vst [vmem:[#allocation7 + $0xb0] sm:$0xff] %v928_v43  ;;  %v931_v45 = vpop.f32.mrb[5].mxu1  ;;  %v483_v56 = vmul.f32 %v663_v41, %v663_v41 }
 0x125   :  { %402 = vst [vmem:[#allocation7 + $0x20] sm:$0xff] %v287_v44  ;;  %v440_v46 = vadd.f32 %v439_v42, %v287_v44  ;;  %v481_v47 = vmul.f32 %v287_v44, %v287_v44  ;;  %v511_v48 = vadd.f32 %v510_v40, %v480_v39  ;;  %v664_v49 = vpop.f32.mrb[6].mxu0  ;;  %418 = vst [vmem:[#allocation7 + $0xa0] sm:$0xff] %v931_v45  ;;  %v934_v50 = vpop.f32.mrb[6].mxu1 }
 0x126   :  { %405 = vst [vmem:[#allocation7 + $0x38] sm:$0xff] %v664_v49  ;;  %v290_v51 = vpop.f32.mrb[7].mxu0  ;;  %421 = vst [vmem:[#allocation7 + $0xb8] sm:$0xff] %v934_v50  ;;  %v937_v52 = vpop.f32.mrb[7].mxu1  ;;  %v484_v59 = vmul.f32 %v664_v49, %v664_v49 }
 0x127   :  { %v512_v53 = vadd.f32 %v511_v48, %v481_v47  ;;  %403 = vst [vmem:[#allocation7 + $0x28] sm:$0xff] %v290_v51  ;;  %v441_v54 = vadd.f32 %v440_v46, %v290_v51  ;;  %v482_v55 = vmul.f32 %v290_v51, %v290_v51  ;;  %419 = vst [vmem:[#allocation7 + $0xa8] sm:$0xff] %v937_v52 }
 0x129   :  { %v442_v57 = vadd.f32 %v663_v41, %v441_v54  ;;  %v513_v58 = vadd.f32 %v512_v53, %v482_v55 }
 0x12b   :  { %v514_v60 = vadd.f32 %v513_v58, %v483_v56  ;;  %v667_v61 = vpop.f32.mrb[8].mxu0  ;;  %v443_v62 = vadd.f32 %v664_v49, %v442_v57  ;;  %v940_v63 = vpop.f32.mrb[8].mxu1 }
 0x12c   :  { %408 = vst [vmem:[#allocation7 + $0x50] sm:$0xff] %v667_v61  ;;  %v303_v0 = vpop.f32.mrb[9].mxu0  ;;  %424 = vst [vmem:[#allocation7 + $0xd0] sm:$0xff] %v940_v63  ;;  %v943_v1 = vpop.f32.mrb[9].mxu1  ;;  %v487_v12 = vmul.f32 %v667_v61, %v667_v61 }
 0x12d   :  { %406 = vst [vmem:[#allocation7 + $0x40] sm:$0xff] %v303_v0  ;;  %v444_v2 = vadd.f32 %v443_v62, %v303_v0  ;;  %v485_v3 = vmul.f32 %v303_v0, %v303_v0  ;;  %v515_v4 = vadd.f32 %v514_v60, %v484_v59  ;;  %v668_v5 = vpop.f32.mrb[10].mxu0  ;;  %422 = vst [vmem:[#allocation7 + $0xc0] sm:$0xff] %v943_v1  ;;  %v946_v6 = vpop.f32.mrb[10].mxu1 }
 0x12e   :  { %409 = vst [vmem:[#allocation7 + $0x58] sm:$0xff] %v668_v5  ;;  %v306_v7 = vpop.f32.mrb[11].mxu0  ;;  %425 = vst [vmem:[#allocation7 + $0xd8] sm:$0xff] %v946_v6  ;;  %v949_v8 = vpop.f32.mrb[11].mxu1  ;;  %v488_v15 = vmul.f32 %v668_v5, %v668_v5 }
 0x12f   :  { %v516_v9 = vadd.f32 %v515_v4, %v485_v3  ;;  %407 = vst [vmem:[#allocation7 + $0x48] sm:$0xff] %v306_v7  ;;  %v445_v10 = vadd.f32 %v444_v2, %v306_v7  ;;  %v486_v11 = vmul.f32 %v306_v7, %v306_v7  ;;  %423 = vst [vmem:[#allocation7 + $0xc8] sm:$0xff] %v949_v8 }
 0x131   :  { %v446_v13 = vadd.f32 %v667_v61, %v445_v10  ;;  %v517_v14 = vadd.f32 %v516_v9, %v486_v11 }
 0x133   :  { %v518_v16 = vadd.f32 %v517_v14, %v487_v12  ;;  %v671_v17 = vpop.f32.mrb[12].mxu0  ;;  %v447_v18 = vadd.f32 %v668_v5, %v446_v13  ;;  %v952_v19 = vpop.f32.mrb[12].mxu1 }
 0x134   :  { %412 = vst [vmem:[#allocation7 + $0x70] sm:$0xff] %v671_v17  ;;  %v319_v20 = vpop.f32.mrb[13].mxu0  ;;  %428 = vst [vmem:[#allocation7 + $0xf0] sm:$0xff] %v952_v19  ;;  %v955_v21 = vpop.f32.mrb[13].mxu1 }
 0x135   :  { %410 = vst [vmem:[#allocation7 + $0x60] sm:$0xff] %v319_v20  ;;  %v448_v22 = vadd.f32 %v447_v18, %v319_v20  ;;  %v489_v23 = vmul.f32 %v319_v20, %v319_v20  ;;  %v519_v24 = vadd.f32 %v518_v16, %v488_v15  ;;  %v672_v25 = vpop.f32.mrb[14].mxu0  ;;  %426 = vst [vmem:[#allocation7 + $0xe0] sm:$0xff] %v955_v21  ;;  %v960_v27 = vpop.f32.mrb[14].mxu1 }
 0x136   :  { %413 = vst [vmem:[#allocation7 + $0x78] sm:$0xff] %v672_v25  ;;  %v322_v29 = vpop.f32.mrb[15].mxu0  ;;  %429 = vst [vmem:[#allocation7 + $0xf8] sm:$0xff] %v960_v27  ;;  %v963_v31 = vpop.f32.mrb[15].mxu1 }
 0x137   :  { %v520_v33 = vadd.f32 %v519_v24, %v489_v23  ;;  %411 = vst [vmem:[#allocation7 + $0x68] sm:$0xff] %v322_v29  ;;  %v449_v34 = vadd.f32 %v448_v22, %v322_v29  ;;  %v490_v35 = vmul.f32 %v322_v29, %v322_v29  ;;  %427 = vst [vmem:[#allocation7 + $0xe8] sm:$0xff] %v963_v31 }
 0x138   :  { %794 = shalt.err (!%p791_p6)
}
 0x139   :  { %s795_s18 = scalar_lea.hbm %s1065_s2, 4096 }
 0x13a   :  { %p796_p7 = scmp.ne.s32.totalorder %s1065_s2, %s795_s18  ;;  %p799_p8 = scmp.lt.u32.totalorder %s795_s18, %s1065_s2 }
 0x13c   :  { %p801_p9 = pnand %p799_p8, %p796_p7 }
 0x13e   :  { %804 = shalt.err (!%p801_p9)
}
 0x13f   :  { %s863_s23 = smov 128   ;;  %s864_s24 = smov 8   ;;  %v491_v36 = vmul.f32 %v671_v17, %v671_v17  ;;  %v450_v37 = vadd.f32 %v671_v17, %v449_v34  ;;  %v521_v38 = vadd.f32 %v520_v33, %v490_v35  ;;  %v492_v39 = vmul.f32 %v672_v25, %v672_v25 }
 0x140   :  { %559 = dma.vmem_to_hbm [thread:$0]  %s957_s14, 4096, %s1065_s2, [#allocation4], %s863_s23, %s863_s23, %s864_s24   ;;  %v493_v42 = vmul.f32 %v919_v28, %v919_v28  ;;  %v494_v49 = vmul.f32 %v925_v32, %v925_v32  ;;  %v495_v51 = vmul.f32 %v916_v26, %v916_v26  ;;  %v496_v55 = vmul.f32 %v922_v30, %v922_v30 }
 0x141   :  { %v522_v40 = vadd.f32 %v521_v38, %v491_v36  ;;  %v451_v41 = vadd.f32 %v672_v25, %v450_v37  ;;  %v498_v61 = vmul.f32 %v937_v52, %v937_v52  ;;  %v502_v9 = vmul.f32 %v949_v8, %v949_v8  ;;  %v436_v38 = vld [vmem:[#allocation8] sm:$0x1]  ;;  %s865_s2 = smov [#allocation8]   ;;  %s866_s28 = smov [#allocation10]  }
 0x142   :  { %v506_v17 = vmul.f32 %v963_v31, %v963_v31  ;;  %s566_s27 = sshll.u32 %s865_s2, 4  ;;  %s576_s29 = sshll.u32 %s866_s28, 4  ;;  %s567_s27 = int_to_ptr.vmem [resolvable:$true] %s566_s27  ;;  %s1031_s29 = int_to_ptr.vmem [resolvable:$true] %s576_s29 }
 0x143   :  { %v452_v44 = vadd.f32 %v451_v41, %v919_v28  ;;  %v523_v46 = vadd.f32 %v522_v40, %v492_v39  ;;  %v497_v28 = vmul.f32 %v931_v45, %v931_v45  ;;  %v476_v40 = vld [vmem:[#allocation10] sm:$0x1]  ;;  %s805_s30 = scalar_lea.vmem %s567_s27, 16  ;;  %s809_s5 = scalar_lea.vmem %s567_s27, 32 }
 0x144   :  { %p806_p10 = scmp.ne.s32.totalorder %s567_s27, %s805_s30  ;;  %p810_p11 = scmp.lt.s32.totalorder %s567_s27, %s567_s27 }
 0x145   :  { %v524_v47 = vadd.f32 %v523_v46, %v493_v42  ;;  %v453_v48 = vadd.f32 %v452_v44, %v925_v32  ;;  %p811_p12 = scmp.lt.s32.totalorder %s809_s5, %s805_s30 }
 0x147   :  { %v454_v53 = vadd.f32 %v916_v26, %v453_v48  ;;  %v525_v54 = vadd.f32 %v524_v47, %v494_v49  ;;  %v499_v26 = vmul.f32 %v928_v43, %v928_v43  ;;  %p812_p13 = por %p811_p12, %p810_p11 }
 0x149   :  { %v526_v56 = vadd.f32 %v525_v54, %v495_v51  ;;  %v455_v57 = vadd.f32 %v922_v30, %v454_v53  ;;  %v500_v30 = vmul.f32 %v934_v50, %v934_v50  ;;  %p813_p0 = pnand %p812_p13, %p806_p10 }
 0x14b   :  { %v456_v58 = vadd.f32 %v455_v57, %v931_v45  ;;  %v527_v59 = vadd.f32 %v526_v56, %v496_v55  ;;  %v501_v45 = vmul.f32 %v943_v1, %v943_v1 }
 0x14d   :  { %v528_v60 = vadd.f32 %v527_v59, %v497_v28  ;;  %v457_v32 = vadd.f32 %v456_v58, %v937_v52 }
 0x14f   :  { %v458_v62 = vadd.f32 %v928_v43, %v457_v32  ;;  %v529_v0 = vadd.f32 %v528_v60, %v498_v61  ;;  %v503_v43 = vmul.f32 %v940_v63, %v940_v63 }
 0x151   :  { %v530_v2 = vadd.f32 %v529_v0, %v499_v26  ;;  %v459_v3 = vadd.f32 %v934_v50, %v458_v62  ;;  %v504_v50 = vmul.f32 %v946_v6, %v946_v6 }
 0x153   :  { %v460_v4 = vadd.f32 %v459_v3, %v943_v1  ;;  %v531_v5 = vadd.f32 %v530_v2, %v500_v30  ;;  %v505_v1 = vmul.f32 %v955_v21, %v955_v21 }
 0x155   :  { %v532_v7 = vadd.f32 %v531_v5, %v501_v45  ;;  %v461_v52 = vadd.f32 %v460_v4, %v949_v8 }
 0x157   :  { %v462_v10 = vadd.f32 %v940_v63, %v461_v52  ;;  %v533_v11 = vadd.f32 %v532_v7, %v502_v9  ;;  %v507_v63 = vmul.f32 %v952_v19, %v952_v19 }
 0x159   :  { %v534_v12 = vadd.f32 %v533_v11, %v503_v43  ;;  %v463_v13 = vadd.f32 %v946_v6, %v462_v10  ;;  %v508_v6 = vmul.f32 %v960_v27, %v960_v27 }
 0x15b   :  { %v464_v14 = vadd.f32 %v463_v13, %v955_v21  ;;  %v535_v15 = vadd.f32 %v534_v12, %v504_v50 }
 0x15d   :  { %v536_v16 = vadd.f32 %v535_v15, %v505_v1  ;;  %v465_v8 = vadd.f32 %v464_v14, %v963_v31 }
 0x15f   :  { %v466_v18 = vadd.f32 %v952_v19, %v465_v8  ;;  %v537_v20 = vadd.f32 %v536_v16, %v506_v17 }
 0x161   :  { %v467_v22 = vadd.f32 %v960_v27, %v466_v18  ;;  %v538_v23 = vadd.f32 %v537_v20, %v507_v63 }
 0x163   :  { %v468_v21 = vrot.slane %v467_v22, 4  ;;  %v539_v24 = vadd.f32 %v538_v23, %v508_v6 }
 0x165   :  { %v469_v25 = vadd.f32 %v468_v21, %v467_v22  ;;  %v540_v29 = vrot.slane %v539_v24, 4 }
 0x167   :  { %v470_v33 = vrot.slane %v469_v25, 2  ;;  %v541_v34 = vadd.f32 %v540_v29, %v539_v24 }
 0x169   :  { %v471_v35 = vadd.f32 %v470_v33, %v469_v25  ;;  %v542_v31 = vrot.slane %v541_v34, 2 }
 0x16b   :  { %v543_v36 = vadd.f32 %v542_v31, %v541_v34  ;;  %v472_v37 = vrot.slane %v471_v35, 1 }
 0x16d   :  { %v473_v19 = vadd.f32 %v472_v37, %v471_v35  ;;  %v544_v39 = vrot.slane %v543_v36, 1 }
 0x16f   :  { %v474_v27 = vadd.f32 %v473_v19, %v436_v38  ;;  %v545_v41 = vadd.f32 %v544_v39, %v543_v36 }
 0x171   :  { %475 = vst [vmem:[#allocation8] sm:$0x1] %v474_v27  ;;  %v546_v42 = vadd.f32 %v545_v41, %v476_v40 }
 0x172   :  { %816 = shalt.err (!%p813_p0)
}
 0x173   :  { %s817_s8 = scalar_lea.hbm %s1066_s3, 16 }
 0x174   :  { %p818_p1 = scmp.ne.s32.totalorder %s1066_s3, %s817_s8  ;;  %p821_p2 = scmp.lt.u32.totalorder %s817_s8, %s1066_s3 }
 0x176   :  { %p823_p3 = pnand %p821_p2, %p818_p1 }
 0x178   :  { %826 = shalt.err (!%p823_p3)
}
 0x179   :  { %569 = dma.vmem_to_hbm [thread:$0]  %s567_s27, 16, %s1066_s3, [#allocation9]   ;;  %547 = vst [vmem:[#allocation10] sm:$0x1] %v546_v42 }
 0x17a   :  { %s827_s1 = scalar_lea.vmem %s1031_s29, 16  ;;  %s831_s14 = scalar_lea.vmem %s1031_s29, 32 }
 0x17b   :  { %p828_p4 = scmp.ne.s32.totalorder %s1031_s29, %s827_s1  ;;  %p832_p5 = scmp.lt.s32.totalorder %s1031_s29, %s1031_s29 }
 0x17c   :  { %p833_p6 = scmp.lt.s32.totalorder %s831_s14, %s827_s1 }
 0x17e   :  { %p834_p7 = por %p833_p6, %p832_p5 }
 0x180   :  { %p835_p8 = pnand %p834_p7, %p828_p4 }
 0x182   :  { %838 = shalt.err (!%p835_p8)
}
 0x183   :  { %s839_s17 = scalar_lea.hbm %s1067_s4, 16 }
 0x184   :  { %p840_p9 = scmp.ne.s32.totalorder %s1067_s4, %s839_s17  ;;  %p843_p10 = scmp.lt.u32.totalorder %s839_s17, %s1067_s4 }
 0x186   :  { %p845_p11 = pnand %p843_p10, %p840_p9 }
 0x188   :  { %848 = shalt.err (!%p845_p11)
}
 0x189   :  { %579 = dma.vmem_to_hbm [thread:$0]  %s1031_s29, 16, %s1067_s4, [#allocation9]  }
 0x18a   :  { %853 = dma.done.wait [#allocation4], 4096  }
 0x18b   :  { %854 = vsyncadd [#allocation4], 4294963200 }
 0x18c   :  { %855 = dma.done.wait [#allocation9], 32  }
 0x18d   :  { %856 = vsyncadd [#allocation9], 4294967264 }
 0x18e   :  { %589 = vsyncpa [#allocation3], 1 }
 0x18f   :  { %590 = vsyncpa [#allocation6], 1 }
 0x190   :  { %591 = vsyncpa [#allocation4], 1 }
 0x191   :  { %592 = vsyncpa [#allocation9], 1 }

</bundles_post_ra>
